<compile_context>
chip_gen: v7x
topology: tpu7x:2x2x1
jax: 0.10.0
libtpu: 0.0.40
codegen_flags: <defaults>
</compile_context>

<pallas_src>
import functools

import jax
import jax.numpy as jnp
from jax.experimental import pallas as pl
from jax.experimental.pallas import tpu as pltpu

C_CONST = 0.85
EPS = 1e-6
# pl.reciprocal(approx=True) adds ~2^-12 relative error to the normalization;
# set to False for exact division (still well within the test tolerance).
APPROX_RECIPROCAL = True


def _round_up(v, m):
    return (v + m - 1) // m * m


def _largest_divisor(n, cap):
    cap = max(1, min(cap, n))
    for d in range(cap, 0, -1):
        if n % d == 0:
            return d
    return 1


def _pad_cast(a, shape, dtype):
    """Cast (and zero-pad only if needed) to `shape`/`dtype`."""
    if tuple(a.shape) == tuple(shape):
        return a.astype(dtype)
    buf = jnp.zeros(shape, dtype)
    return buf.at[tuple(slice(0, s) for s in a.shape)].set(a.astype(dtype))


def gcn_kernel(x_ref, adj_ref, w_ref, out_ref, *, n_true):
    # x_ref:   (bt, n_k,   di_pad)  bf16   (rows = contraction index, 128-pad)
    # adj_ref: (bt, n_row, n_k)     bf16   (rows = output rows, 16-pad)
    # w_ref:   (di_pad, t_o)        bf16   (c already folded in)
    # out_ref: (bt, n_row, t_o)     f32
    bt, n_k, di = x_ref.shape
    n_row = adj_ref.shape[1]
    t_o = w_ref.shape[1]

    # XW with the batch folded into M so the MXU sees bt*n_k rows at once.
    xw = jnp.dot(x_ref[...].reshape(bt * n_k, di), w_ref[...],
                 preferred_element_type=jnp.float32)
    xw = xw.reshape(bt, n_k, t_o).astype(jnp.bfloat16)

    # AXW: bf16 operands, f32 accumulation on the MXU.
    axw = jnp.einsum("bnm,bmo->bno", adj_ref[...], xw,
                     preferred_element_type=jnp.float32)

    # Diagonal add of eye(N) restricted to true rows/cols (c is folded into W,
    # so axw already carries the 0.85 factor).  Padded adj rows are zero, so
    # padded rows of y_relu stay zero and the column mean below is exact.
    j = pl.program_id(1)
    row = jax.lax.broadcasted_iota(jnp.int32, (n_row, t_o), 0)
    col = jax.lax.broadcasted_iota(jnp.int32, (n_row, t_o), 1) + j * t_o
    diag = (row == col) & (row < n_true)
    y_relu = jnp.maximum(jnp.where(diag[None], axw + 1.0, axw), 0.0)

    # Column mean over the true row count + eps.
    col_mean = jnp.sum(y_relu, axis=1, keepdims=True) * (1.0 / n_true) + EPS
    if APPROX_RECIPROCAL:
        y_norm = y_relu * pl.reciprocal(col_mean, approx=True)
    else:
        y_norm = y_relu / col_mean

    # softplus(y) with y >= 0: y + log1p(exp(-y))  (overflow-safe, 2 EUP ops).
    out_ref[...] = (y_norm + jnp.log1p(jnp.exp(-y_norm))).astype(out_ref.dtype)


def gcn_forward(x, adj, kernel, neg_penalty=0.0):
    """x: (B, N, in_dim), adj: (B, N, N), kernel: (in_dim, out_dim)."""
    # TODO(synk): the torch module's `x is None` branch (AXW = adj @ W) is not
    # implemented; this wrapper always requires x.
    B, N, in_dim = x.shape
    out_dim = kernel.shape[1]
    assert adj.shape == (B, N, N)
    assert out_dim == N, "eye + c*AXW broadcasting requires out_dim == N"

    # Mixed padding: lane (last) axes to 128, sublane (row) axes to 16 only.
    n_row = _round_up(N, 16)      # adj rows / out rows (sublane)
    n_k = _round_up(N, 128)       # adj cols (lane) == x rows (contraction)
    di_pad = _round_up(in_dim, 128)
    do_pad = _round_up(out_dim, 128)

    # Output-column tile (second grid axis).
    t_o = 256 if do_pad % 256 == 0 else 128
    n_col_tiles = do_pad // t_o

    # bf16 at the kernel boundary; c folded into W so the kernel skips c*AXW.
    # TODO(synk): for repeated calls, hoist these casts/pads out of the call.
    x_p = _pad_cast(x, (B, n_k, di_pad), jnp.bfloat16)
    adj_p = _pad_cast(adj, (B, n_row, n_k), jnp.bfloat16)
    w_p = _pad_cast(C_CONST * kernel.astype(jnp.float32), (di_pad, do_pad),
                    jnp.bfloat16)

    # VMEM accounting: double-buffered DMA tiles + live in-kernel intermediates.
    io_per_graph = (n_row * n_k * 2        # adj (bf16)
                    + n_k * di_pad * 2     # x   (bf16)
                    + n_row * t_o * 4)     # out (f32)
    inter_per_graph = (n_k * t_o * (4 + 2)       # xw f32 + bf16 copy
                       + n_row * t_o * 4 * 4)    # axw / y_relu / y_norm / out
    per_graph = 2 * io_per_graph + inter_per_graph
    fixed = 2 * di_pad * t_o * 2 + n_row * t_o * 8 + (1 << 20)  # W + iotas + slack

    vmem_budget = 40 << 20                 # sizing budget, < 48 MiB cap below
    bt_budget = max(1, (vmem_budget - fixed) // per_graph)
    bt = _largest_divisor(B, min(16, bt_budget))
    # Keep >= 2 grid steps for pipelining / v7x megacore when there is only a
    # single column tile and more than one graph.
    if n_col_tiles == 1 and B >= 2 and B // bt < 2:
        bt = _largest_divisor(B, B // 2)
    grid = (B // bt, n_col_tiles)
    # TODO(synk): for very large N (adj tile alone >> the budget at bt=1) add
    # row tiling over n_row with a cross-tile column-sum accumulator.

    needed = fixed + bt * per_graph
    vmem_limit = int(min(max(needed, 16 << 20), 48 << 20))  # <=48 MiB: v7x headroom

    flops = 2 * B * n_k * di_pad * do_pad + 2 * B * n_row * n_k * do_pad
    bytes_accessed = (B * n_row * n_k * 2 + B * n_k * di_pad * 2
                      + di_pad * do_pad * 2 + B * n_row * do_pad * 4)

    out_p = pl.pallas_call(
        functools.partial(gcn_kernel, n_true=N),
        out_shape=jax.ShapeDtypeStruct((B, n_row, do_pad), jnp.float32),
        grid_spec=pltpu.PrefetchScalarGridSpec(
            num_scalar_prefetch=0,
            grid=grid,
            in_specs=[
                # x / adj block indices independent of j -> no re-DMA across
                # column tiles of the same batch block.
                pl.BlockSpec((bt, n_k, di_pad), lambda b, j: (b, 0, 0)),
                pl.BlockSpec((bt, n_row, n_k), lambda b, j: (b, 0, 0)),
                pl.BlockSpec((di_pad, t_o), lambda b, j: (0, j)),
            ],
            out_specs=pl.BlockSpec((bt, n_row, t_o), lambda b, j: (b, 0, j)),
        ),
        compiler_params=pltpu.CompilerParams(
            dimension_semantics=("parallel", "parallel"),
            vmem_limit_bytes=vmem_limit),
        cost_estimate=pl.CostEstimate(
            flops=int(flops),
            transcendentals=int(3 * B * n_row * do_pad),
            bytes_accessed=int(bytes_accessed)),
    )(x_p, adj_p, w_p)

    # Padded columns hold softplus(0)=ln(2); they are sliced off here.
    out = out_p[:, :N, :out_dim]

    # Side effect in the torch module: neg_loss appended to self.losses (not
    # part of the returned tensor). Computed here in plain JAX for parity.
    neg_loss = neg_penalty * jnp.sum(jnp.maximum(1e-6 - kernel, 0.0))
    return out, neg_loss


if __name__ == "__main__":
    B, N, in_dim = 2, 16, 8
    out_dim = N  # required by the module's eye + c*AXW broadcast
    neg_penalty = 0.2

    key = jax.random.PRNGKey(0)
    kx, ka, kw = jax.random.split(key, 3)

    x = jax.random.normal(kx, (B, N, in_dim), dtype=jnp.float32)
    adj_raw = jax.random.uniform(ka, (B, N, N), dtype=jnp.float32)
    adj = 0.5 * (adj_raw + jnp.swapaxes(adj_raw, -1, -2))  # symmetric adjacency
    limit = (6.0 / (in_dim + out_dim)) ** 0.5
    W = jax.random.uniform(kw, (in_dim, out_dim), dtype=jnp.float32,
                           minval=-limit, maxval=limit)

    out, neg_loss = gcn_forward(x, adj, W, neg_penalty)
    jax.block_until_ready(out)
    jax.block_until_ready(neg_loss)

    # Reference mirroring the kernel's dtype policy (bf16 inputs, c folded
    # into W, f32 accumulation, xw rounded to bf16 before the second matmul).
    xb = x.astype(jnp.bfloat16).astype(jnp.float32)
    ab = adj.astype(jnp.bfloat16).astype(jnp.float32)
    wb = (C_CONST * W).astype(jnp.bfloat16).astype(jnp.float32)
    xw = jnp.einsum("bni,io->bno", xb, wb)
    xw = xw.astype(jnp.bfloat16).astype(jnp.float32)
    axw = jnp.einsum("bnm,bmo->bno", ab, xw)
    i_caxw = jnp.eye(N, dtype=jnp.float32) + axw
    y_relu = jnp.maximum(i_caxw, 0.0)
    col_mean = jnp.mean(y_relu, axis=-2, keepdims=True) + EPS
    y_norm = y_relu / col_mean
    ref = y_norm + jnp.log1p(jnp.exp(-y_norm))

    assert out.shape == (B, N, out_dim)
    assert bool(jnp.all(jnp.isfinite(out)))
    assert jnp.allclose(out, ref, atol=1e-2, rtol=1e-2), "mismatch vs reference"

    print("KERNEL_OK")
</pallas_src>

<mosaic_0001>
module attributes {stable_mosaic.version = 11 : i64} {
  func.func @gcn_kernel(%arg0: i32, %arg1: i32, %arg2: memref<1x128x128xbf16, #tpu.memory_space<vmem>>, %arg3: memref<1x16x128xbf16, #tpu.memory_space<vmem>>, %arg4: memref<128x128xbf16, #tpu.memory_space<vmem>>, %arg5: memref<1x16x128xf32, #tpu.memory_space<vmem>>) attributes {dimension_semantics = [#tpu.dimension_semantics<parallel>, #tpu.dimension_semantics<parallel>], iteration_bounds = array<i64: 2, 1>, scalar_prefetch = 0 : i64, scratch_operands = 0 : i64, tpu.core_type = #tpu.core_type<tc>, window_params = [{transform_indices = @transform_0, window_bounds = array<i64: 1, 128, 128>}, {transform_indices = @transform_1, window_bounds = array<i64: 1, 16, 128>}, {transform_indices = @transform_2, window_bounds = array<i64: 128, 128>}, {transform_indices = @transform_3, window_bounds = array<i64: 1, 16, 128>}]} {
    %c0 = arith.constant 0 : index
    %c0_0 = arith.constant 0 : index
    %c0_1 = arith.constant 0 : index
    %0 = vector.load %arg2[%c0, %c0_0, %c0_1] : memref<1x128x128xbf16, #tpu.memory_space<vmem>>, vector<1x128x128xbf16>
    %1 = vector.shape_cast %0 : vector<1x128x128xbf16> to vector<128x128xbf16>
    %c0_2 = arith.constant 0 : index
    %c0_3 = arith.constant 0 : index
    %2 = vector.load %arg4[%c0_2, %c0_3] : memref<128x128xbf16, #tpu.memory_space<vmem>>, vector<128x128xbf16>
    %cst = arith.constant dense<0.000000e+00> : vector<128x128xf32>
    %3 = tpu.matmul %1, %2, %cst {dimension_numbers = #tpu.dot_dimension_numbers<[1], [0], [0], [1], [0, 0, 1, 1], [], []>} : vector<128x128xbf16>, vector<128x128xbf16>, vector<128x128xf32> -> vector<128x128xf32>
    %4 = vector.shape_cast %3 : vector<128x128xf32> to vector<1x128x128xf32>
    %5 = arith.truncf %4 : vector<1x128x128xf32> to vector<1x128x128xbf16>
    %c0_4 = arith.constant 0 : index
    %c0_5 = arith.constant 0 : index
    %c0_6 = arith.constant 0 : index
    %6 = vector.load %arg3[%c0_4, %c0_5, %c0_6] : memref<1x16x128xbf16, #tpu.memory_space<vmem>>, vector<1x16x128xbf16>
    "tpu.trace_start"() <{level = 10 : i32, message = "bnm,bmo->bno"}> : () -> ()
    %cst_7 = arith.constant dense<0.000000e+00> : vector<1x16x128xf32>
    %7 = tpu.matmul %6, %5, %cst_7 {dimension_numbers = #tpu.dot_dimension_numbers<[2], [1], [1], [2], [0, 0, 0, 1, 1, 2], [0], [0]>} : vector<1x16x128xbf16>, vector<1x128x128xbf16>, vector<1x16x128xf32> -> vector<1x16x128xf32>
    "tpu.trace_stop"() : () -> ()
    %8 = tpu.iota {dimensions = array<i32: 0>} : vector<16x128xi32>
    %9 = tpu.iota {dimensions = array<i32: 1>} : vector<16x128xi32>
    %c128_i32 = arith.constant 128 : i32
    %10 = arith.muli %arg1, %c128_i32 : i32
    %11 = vector.broadcast %10 : i32 to vector<16x128xi32>
    %12 = arith.addi %9, %11 : vector<16x128xi32>
    %13 = arith.cmpi eq, %8, %12 : vector<16x128xi32>
    %c16_i32 = arith.constant 16 : i32
    %14 = vector.broadcast %c16_i32 : i32 to vector<16x128xi32>
    %15 = arith.cmpi slt, %8, %14 : vector<16x128xi32>
    %16 = arith.andi %13, %15 : vector<16x128xi1>
    %17 = vector.shape_cast %16 : vector<16x128xi1> to vector<1x16x128xi1>
    %cst_8 = arith.constant 1.000000e+00 : f32
    %18 = vector.broadcast %cst_8 : f32 to vector<1x16x128xf32>
    %19 = arith.addf %7, %18 : vector<1x16x128xf32>
    %20 = arith.select %17, %19, %7 : vector<1x16x128xi1>, vector<1x16x128xf32>
    %cst_9 = arith.constant 0.000000e+00 : f32
    %21 = vector.broadcast %cst_9 : f32 to vector<1x16x128xf32>
    %22 = arith.maximumf %20, %21 : vector<1x16x128xf32>
    %cst_10 = arith.constant dense<0.000000e+00> : vector<1x128xf32>
    %23 = vector.multi_reduction <add>, %22, %cst_10 [1] : vector<1x16x128xf32> to vector<1x128xf32>
    %24 = vector.shape_cast %23 : vector<1x128xf32> to vector<1x1x128xf32>
    %cst_11 = arith.constant 6.250000e-02 : f32
    %25 = vector.broadcast %cst_11 : f32 to vector<1x1x128xf32>
    %26 = arith.mulf %24, %25 : vector<1x1x128xf32>
    %cst_12 = arith.constant 9.99999997E-7 : f32
    %27 = vector.broadcast %cst_12 : f32 to vector<1x1x128xf32>
    %28 = arith.addf %26, %27 : vector<1x1x128xf32>
    %29 = tpu.reciprocal %28 {approx = true} : vector<1x1x128xf32> -> vector<1x1x128xf32>
    %30 = vector.broadcast %29 : vector<1x1x128xf32> to vector<1x16x128xf32>
    %31 = arith.mulf %22, %30 : vector<1x16x128xf32>
    %cst_13 = arith.constant 0.000000e+00 : f32
    %32 = vector.broadcast %cst_13 : f32 to vector<1x16x128xf32>
    %33 = arith.subf %32, %31 : vector<1x16x128xf32>
    %34 = math.exp %33 : vector<1x16x128xf32>
    %35 = math.log1p %34 : vector<1x16x128xf32>
    %36 = arith.addf %31, %35 : vector<1x16x128xf32>
    %c0_14 = arith.constant 0 : index
    %c0_15 = arith.constant 0 : index
    %c0_16 = arith.constant 0 : index
    %37 = vector.load %arg5[%c0_14, %c0_15, %c0_16] : memref<1x16x128xf32, #tpu.memory_space<vmem>>, vector<1x16x128xf32>
    tpu.vector_store %arg5[%c0_14, %c0_15, %c0_16], %36 {strides = array<i32>} : memref<1x16x128xf32, #tpu.memory_space<vmem>>, vector<1x16x128xf32>,
    return
  }
  func.func @transform_0(%arg0: i32, %arg1: i32) -> (i32, i32, i32) {
    %c0_i32 = arith.constant 0 : i32
    %c0_i32_0 = arith.constant 0 : i32
    %c0_i32_1 = arith.constant 0 : i32
    return %arg0, %c0_i32, %c0_i32_0 : i32, i32, i32
  }
  func.func @transform_1(%arg0: i32, %arg1: i32) -> (i32, i32, i32) {
    %c0_i32 = arith.constant 0 : i32
    %c0_i32_0 = arith.constant 0 : i32
    %c0_i32_1 = arith.constant 0 : i32
    return %arg0, %c0_i32, %c0_i32_0 : i32, i32, i32
  }
  func.func @transform_2(%arg0: i32, %arg1: i32) -> (i32, i32) {
    %c0_i32 = arith.constant 0 : i32
    %c0_i32_0 = arith.constant 0 : i32
    return %c0_i32, %arg1 : i32, i32
  }
  func.func @transform_3(%arg0: i32, %arg1: i32) -> (i32, i32, i32) {
    %c0_i32 = arith.constant 0 : i32
    %c0_i32_0 = arith.constant 0 : i32
    return %arg0, %c0_i32, %arg1 : i32, i32, i32
  }
}

</mosaic_0001>

<bundles_post_ra>
// kernel: tpu_custom_call.1
= control target key start
LH: loop header
LB: loop body
LE: loop exit
PB: predicated region body
PF: predicated region fallthrough
CT: control target
= control target key end

     0   :  { %s1465_s0 = inlined_call_operand.hbm [shape: bf16[2,128,128], index: 0, kind: input, shape index: {}]   ;;  %s1466_s1 = inlined_call_operand.hbm [shape: bf16[2,16,128], index: 1, kind: input, shape index: {}]   ;;  %s1467_s2 = inlined_call_operand.hbm [shape: bf16[128,128], index: 2, kind: input, shape index: {}]   ;;  %s1468_s3 = inlined_call_operand.hbm [shape: f32[2,16,128], index: 3, kind: output, shape index: {}]  }
   0x1   :  { %1475 = sst [smem:[#allocation14_spill]] %s1465_s0 }
   0x2   :  { %1476 = sst [smem:[#allocation15_spill]] %s1467_s2 }
   0x3   :  { %8 = vsyncpa [#allocation3], 0 }
   0x4   :  { %10 = vsyncpa [#allocation3 + $0x1], 0 }
   0x5   :  { %11 = vsyncpa [#allocation6], 0 }
   0x6   :  { %13 = vsyncpa [#allocation6 + $0x1], 0 }
   0x7   :  { %14 = vsyncpa [#allocation4], 0 }
   0x8   :  { %16 = vsyncpa [#allocation4 + $0x1], 0  ;;  %s1178_s12 = smov 0   ;;  %s1180_s13 = smov 0  }
   0x9   :  { %s1182_s14 = smov 0   ;;  %s1184_s15 = smov 0  }
   0xa   :  { %s1186_s16 = smov 0   ;;  %s1188_s17 = smov 0  }
   0xb LB: > { %s1209_s18 = sadd.s32 4294967295, %s1146_s17   ;;  %s740_s19 = sadd.s32 4294967294, %s1146_s17   ;;  %s1146_s17 = sphi %s1188_s17, %s22_s17   ;;  %s1142_s16 = sphi %s1186_s16, %s1501_s16   ;;  %s1138_s15 = sphi %s1184_s15, %s1500_s15   ;;  %s1134_s14 = sphi %s1182_s14, %s1499_s14   ;;  %s1130_s13 = sphi %s1180_s13, %s1498_s13   ;;  %s1126_s12 = sphi %s1178_s12, %s1497_s12  }
   0xc   : > { %p54_p0 = scmp.ne.s32.totalorder %s1130_s13, %s1126_s12  ;;  %p1469_p1 = scmp.eq.s32.totalorder %s1209_s18, 0 }
   0xd   : > { %p138_p3 = scmp.eq.s32.totalorder %s740_s19, 1  ;;  %p741_p5 = scmp.ge.s32.totalorder %s1146_s17, 1 }
   0xe   : > { %p1218_p4 = por %p1469_p1, %p54_p0  ;;  %p145_p7 = scmp.lt.s32.totalorder %s1146_s17, 3 }
   0xf   : > { %p1223_p6 = por %p138_p3, %p54_p0  ;;  %s1148_s23 = smov [#allocation7]  }
  0x10   : > { %s1477_s20 = scalar_select %p1218_p4, 1, 0 }
  0x11   : > { %s1478_s21 = scalar_select %p1223_p6, 1, 0 }
  0x12   : > { %p1228_p8 = pnand %p741_p5, %p145_p7  ;;  %s159_s24 = sshll.u32 %s1148_s23, 4  ;;  %s160_s24 = int_to_ptr.vmem [resolvable:$true] %s159_s24 }
  0x13   : > { %s34_s26 = sadd.s32 1, %s1142_s16  ;;  %s1481_s2 = sld [smem:[#allocation15_spill]] }
  0x14   : > { %s1479_s22 = scalar_select %p1228_p8, 1, 0 }
  0x15   : > { %p867_p9 = pneg %p1228_p8 }
  0x17   : > { %p1237_p11 = pnand %p867_p9, %p1469_p1 }
  0x19   : > { %s968_s29 = scalar_lea.hbm %s1481_s2, 1024  ;;  %p970_p13 = pneg %p1237_p11 }
  0x1a   : > { %p969_p12 = scmp.ne.s32.totalorder %s1481_s2, %s968_s29  ;;  %p975_p5 = scmp.lt.u32.totalorder %s968_s29, %s1481_s2 }
  0x1c   : > { %p971_p0 = pnand %p970_p13, %p969_p12 }
  0x1e   : > { %p972_p3 = pneg %p971_p0 }
  0x20   : > { %p977_p7 = pnand %p975_p5, %p972_p3 }
  0x22   : > { %980 = shalt.err (!%p977_p7)
}
  0x23   : > { %s981_s7 = scalar_lea.vmem %s160_s24, 1024  ;;  %p989_p2 = scmp.lt.s32.totalorder %s160_s24, %s160_s24 }
  0x24   : > { %p982_p9 = scmp.ne.s32.totalorder %s160_s24, %s981_s7  ;;  %p990_p6 = scmp.lt.s32.totalorder %s981_s7, %s981_s7 }
  0x26   : > { %p984_p10 = pnand %p982_p9, %p970_p13  ;;  %p991_p4 = por %p990_p6, %p989_p2 }
  0x28   : > { %p985_p1 = pneg %p984_p10 }
  0x2a   : > { %p992_p8 = pnand %p991_p4, %p985_p1 }
  0x2c   : > { %995 = shalt.err (!%p992_p8)
}
  0x2d   : > { %s1472_s8 = smov 64   ;;  %s1150_s9 = smov 4  }
  0x2e   : > { %870 = dma.hbm_to_vmem [thread:$0]  (!%p1237_p11), %s1481_s2, 1024, %s160_s24, [#allocation6], %s1472_s8, %s1472_s8, %s1150_s9  }
  0x2f   : > { %p36_p1 = scmp.ge.s32.totalorder %s34_s26, 2  ;;  %s41_s19 = sadd.s32 1, %s1134_s14 }
  0x30   : > { %p48_p2 = scmp.ne.s32.totalorder %s1134_s14, %s1130_s13  ;;  %p49_p4 = scmp.eq.s32.totalorder %s1146_s17, 0 }
  0x31   : > { %s1503_s26 = smov (%p36_p1, %s34_s26), 0  ;;  %p1484_p8 = scmp.eq.s32.totalorder %s1209_s18, 1 }
  0x32   : > { %1482 = sst [smem:[#allocation13_spill]] %s1503_s26  ;;  %p1267_p6 = por %p49_p4, %p48_p2 }
  0x33   : > { %p1273_p10 = por %p1484_p8, %p48_p2  ;;  %s38_s27 = ssub.s32 %s1142_s16, %s1503_s26 }
  0x34   : > { %p883_p11 = scmp.lt.s32.totalorder %s1146_s17, 2  ;;  %p39_p12 = scmp.eq.s32.totalorder %s38_s27, 0 }
  0x35   : > { %s1281_s24 = sand.u32 1, %s1134_s14   ;;  %s777_s30 = sshll.u32 %s1142_s16, 10 }
  0x36   : > { %s744_s28 = sshll.u32 %s1281_s24, 6  ;;  %s1486_s0 = sld [smem:[#allocation14_spill]] }
  0x37   : > { %s1285_s29 = scalar_select %p39_p12, %s1134_s14, %s41_s19  }
  0x38   : > { %s177_s7 = scalar_lea.vmem [#allocation2], %s744_s28  ;;  %p1297_p13 = pnand %p883_p11, %p1267_p6 }
  0x39   : > { %s184_s10 = sshll.u32 %s177_s7, 4  ;;  %s747_s27 = sshll.u32 %s1281_s24, 3  ;;  %s1293_s10 = int_to_ptr.vmem [resolvable:$true] %s184_s10 }
  0x3a   : > { %s174_s4 = scalar_lea.sflag [#allocation3], %s1281_s24  ;;  %p998_p3 = pneg %p1297_p13 }
  0x3c   : > { %s1291_s6 = scalar_lea.hbm %s1486_s0, %s777_s30  ;;  %s1001_s23 = scalar_lea.hbm %s1486_s0, 2048 }
  0x3d   : > { %s996_s30 = scalar_lea.hbm %s1291_s6, 1024  ;;  %p1002_p9 = scmp.lt.u32.totalorder %s1291_s6, %s1486_s0 }
  0x3e   : > { %p997_p0 = scmp.ne.s32.totalorder %s1291_s6, %s996_s30  ;;  %p1003_p1 = scmp.lt.u32.totalorder %s1001_s23, %s996_s30 }
  0x3f   : > { %p1005_p4 = scmp.lt.u32.totalorder %s996_s30, %s1291_s6 }
  0x40   : > { %p999_p5 = pnand %p998_p3, %p997_p0  ;;  %p1004_p2 = por %p1003_p1, %p1002_p9 }
  0x42   : > { %p1000_p7 = pneg %p999_p5  ;;  %p1006_p6 = por %p1005_p4, %p1004_p2 }
  0x44   : > { %p1007_p8 = pnand %p1006_p6, %p1000_p7 }
  0x46   : > { %1010 = shalt.err (!%p1007_p8)
}
  0x47   : > { %s1011_s19 = scalar_lea.vmem %s1293_s10, 1024  ;;  %s1151_s28 = smov [#allocation2]  }
  0x48   : > { %p1012_p11 = scmp.ne.s32.totalorder %s1293_s10, %s1011_s19  ;;  %s1016_s5 = sshll.u32 %s1151_s28, 4  ;;  %s1017_s5 = int_to_ptr.vmem [resolvable:$false] %s1016_s5 }
  0x49   : > { %s1018_s8 = scalar_lea.vmem %s1017_s5, 2048  ;;  %p1019_p5 = scmp.lt.s32.totalorder %s1293_s10, %s1017_s5 }
  0x4a   : > { %p1014_p12 = pnand %p1012_p11, %p998_p3  ;;  %p1020_p9 = scmp.lt.s32.totalorder %s1018_s8, %s1011_s19 }
  0x4c   : > { %p1015_p0 = pneg %p1014_p12  ;;  %p1021_p1 = por %p1020_p9, %p1019_p5 }
  0x4e   : > { %p1022_p2 = pnand %p1021_p1, %p1015_p0 }
  0x50   : > { %1025 = shalt.err (!%p1022_p2)
}
  0x51   : > { %s1488_s30 = smov 64   ;;  %s778_s23 = sshll.u32 %s1142_s16, 7 }
  0x52   : > { %874 = dma.hbm_to_vmem [thread:$0]  (!%p1297_p13), %s1291_s6, 1024, %s1293_s10, %s174_s4, %s1488_s30, %s1488_s30, %s1150_s9  }
  0x53   : > { %s1338_s28 = scalar_lea.hbm %s1466_s1, %s778_s23  ;;  %s198_s5 = scalar_lea.vmem [#allocation5], %s747_s27 }
  0x54   : > { %s205_s8 = sshll.u32 %s198_s5, 4  ;;  %s1489_s0 = sand.u32 1, %s1146_s17   ;;  %s1342_s8 = int_to_ptr.vmem [resolvable:$true] %s205_s8 }
  0x55   : > { %s1346_s2 = scalar_lea.sflag [#allocation6], %s1489_s0  ;;  %s1026_s26 = scalar_lea.hbm %s1338_s28, 128 }
  0x56   : > { %p1027_p7 = scmp.ne.s32.totalorder %s1338_s28, %s1026_s26  ;;  %s1031_s24 = scalar_lea.hbm %s1466_s1, 256 }
  0x57   : > { %p1032_p8 = scmp.lt.u32.totalorder %s1338_s28, %s1466_s1  ;;  %p1033_p11 = scmp.lt.u32.totalorder %s1031_s24, %s1026_s26 }
  0x58   : > { %p1029_p4 = pnand %p1027_p7, %p998_p3  ;;  %p1035_p0 = scmp.lt.u32.totalorder %s1026_s26, %s1338_s28 }
  0x59   : > { %p1034_p12 = por %p1033_p11, %p1032_p8 }
  0x5a   : > { %p1030_p6 = pneg %p1029_p4 }
  0x5b   : > { %p1036_p5 = por %p1035_p0, %p1034_p12 }
  0x5d   : > { %p1037_p9 = pnand %p1036_p5, %p1030_p6 }
  0x5f   : > { %1040 = shalt.err (!%p1037_p9)
}
  0x60   : > { %s1041_s0 = scalar_lea.vmem %s1342_s8, 128  ;;  %s1152_s27 = smov [#allocation5]  }
  0x61   : > { %p1042_p1 = scmp.ne.s32.totalorder %s1342_s8, %s1041_s0  ;;  %s1046_s7 = sshll.u32 %s1152_s27, 4  ;;  %s1047_s7 = int_to_ptr.vmem [resolvable:$false] %s1046_s7 }
  0x62   : > { %s1048_s19 = scalar_lea.vmem %s1047_s7, 256  ;;  %p1049_p4 = scmp.lt.s32.totalorder %s1342_s8, %s1047_s7 }
  0x63   : > { %p1044_p2 = pnand %p1042_p1, %p998_p3  ;;  %p1050_p8 = scmp.lt.s32.totalorder %s1048_s19, %s1041_s0 }
  0x65   : > { %p1045_p7 = pneg %p1044_p2  ;;  %p1051_p11 = por %p1050_p8, %p1049_p4 }
  0x67   : > { %p1052_p12 = pnand %p1051_p11, %p1045_p7 }
  0x69   : > { %1055 = shalt.err (!%p1052_p12)
}
  0x6a   : > { %877 = dma.hbm_to_vmem [thread:$0]  (!%p1297_p13), %s1338_s28, 128, %s1342_s8, %s1346_s2, %s1488_s30, %s1488_s30, %s1150_s9  }
  0x6b   : > { %p1490_p3 = scmp.ne.s32.totalorder %s1479_s22, 0 }
  0x6c   : > { %s1378_s26 = sand.u32 (!%p1490_p3), 1, %s1130_s13   ;;  %p1491_p6 = scmp.ne.s32.totalorder (!%p1490_p3), %s1477_s20, 0 }
  0x6d   : > { %217 = sbr.rel (%p1490_p3) target bundleno = 703 (0x2bf), region = 32  ;;  %s751_s5 = sshll.u32 (!%p1490_p3), %s1378_s26, 6 }
  0x6e   : > { %s220_s6 = scalar_lea.sflag (!%p1490_p3), [#allocation3], %s1378_s26  ;;  %s1382_s10 = scalar_lea.vmem (!%p1490_p3), [#allocation2], %s751_s5 }
  0x74   : > { %1109 = dma.done.wait (%p1491_p6), %s220_s6, 1024  }
  0x75   : > { %1111 = vsyncadd (%p1491_p6), %s220_s6, 4294966272  ;;  %s228_s2 = sand.u32 1, %s1209_s18   ;;  %s752_s22 = sshll.u32 %s1378_s26, 3 }
  0x76   : > { %s229_s9 = scalar_lea.sflag [#allocation6], %s228_s2  ;;  %s1390_s11 = scalar_lea.vmem [#allocation5], %s752_s22 }
  0x77   : > { %1113 = dma.done.wait (%p1491_p6), %s229_s9, 128  }
  0x78   : > { %1115 = vsyncadd (%p1491_p6), %s229_s9, 4294967168  ;;  %p1492_p13 = scmp.eq.s32.totalorder %s1209_s18, 0 }
  0x7a   : > { %1117 = dma.done.wait (%p1492_p13), [#allocation6], 1024   ;;  %p1493_p0 = pmov %p1492_p13 }
  0x7b   : > { %v941_v0 = vld [vmem:[#allocation7] sm:$0xff]   ;;  %v942_v1 = vld [vmem:[#allocation7 + $0x8] sm:$0xff]   ;;  %v943_v2 = vld [vmem:[#allocation7 + $0x10] sm:$0xff]   ;;  %v1153_v16 = vmov 0.0   ;;  %vm1154_vm0 = vmmov 0   ;;  %v547_v42 = vlaneseq  ;;  %s754_s18 = sshll.u32 %s1378_s26, 4 }
  0x7c   : > { %1119 = vsyncadd (%p1493_p0), [#allocation6], 4294966272  ;;  %805 = vmatprep.subr.bf16.mxu0 %v941_v0  ;;  %v944_v3 = vld [vmem:[#allocation7 + $0x18] sm:$0xff]   ;;  %v949_v4 = vld [vmem:[%s1382_s10] sm:$0xff]   ;;  %837 = vmatprep.subr.bf16.mxu1 %v1153_v16  ;;  %s263_s20 = scalar_lea.vmem [#allocation8], %s754_s18  ;;  %s779_s28 = sshll.u32 %s1138_s15, 8 }
  0x7d   : > { %806 = vmatpush3.bf16.msra.mxu0 %v941_v0  ;;  %821 = vmatprep.mubr.bf16.mxu0 %v949_v4  ;;  %v945_v5 = vld [vmem:[#allocation7 + $0x20] sm:$0xff]   ;;  %v946_v6 = vld [vmem:[#allocation7 + $0x28] sm:$0xff]   ;;  %v947_v7 = vld [vmem:[#allocation7 + $0x30] sm:$0xff]   ;;  %v548_v43 = vshrl.u32 %v547_v42, 7  ;;  %v551_v44 = vand.u32 127, %v547_v42  ;;  %s622_s30 = sshll.u32 %s263_s20, 4  ;;  %s1416_s4 = scalar_lea.hbm %s1468_s3, %s779_s28  ;;  %s1411_s30 = int_to_ptr.vmem [resolvable:$true] %s622_s30 }
  0x7e   : > { %807 = vmatprep.subr.bf16.mxu0 %v942_v1  ;;  %v948_v8 = vld [vmem:[#allocation7 + $0x38] sm:$0xff]   ;;  %v951_v10 = vld [vmem:[%s1382_s10 + $0x10] sm:$0xff]   ;;  %v952_v11 = vld [vmem:[%s1382_s10 + $0x18] sm:$0xff]   ;;  %853 = vmatprep.mubr.msk.bf16.mxu1 %vm1154_vm0, %v1153_v16  ;;  %s608_s15 = scalar_lea.sflag [#allocation4], %s1378_s26  ;;  %s1056_s23 = scalar_lea.vmem %s1411_s30, 256 }
  0x7f   : > { %v950_v9 = vld [vmem:[%s1382_s10 + $0x8] sm:$0xff]   ;;  %v953_v12 = vld [vmem:[%s1382_s10 + $0x20] sm:$0xff]   ;;  %v955_v14 = vld [vmem:[%s1382_s10 + $0x30] sm:$0xff]   ;;  %v549_v45 = vadd.s32 8, %v548_v43  ;;  %vm555_vm1 = vcmp.eq.s32.totalorder %v548_v43, %v551_v44  ;;  %p1057_p5 = scmp.ne.s32.totalorder %s1411_s30, %s1056_s23  ;;  %s1155_s0 = smov [#allocation8]  }
  0x80   : > { %v954_v13 = vld [vmem:[%s1382_s10 + $0x28] sm:$0xff]   ;;  %v956_v15 = vld [vmem:[%s1382_s10 + $0x38] sm:$0xff]   ;;  %s1060_s27 = sshll.u32 %s1155_s0, 4  ;;  %s1061_s27 = int_to_ptr.vmem [resolvable:$false] %s1060_s27 }
  0x81   : > { %808 = vmatpush3.bf16.msra.mxu0 %v942_v1  ;;  %v957_v41 = vld [vmem:[%s1390_s11] sm:$0xff]   ;;  %vm556_vm2 = vcmp.eq.s32.totalorder %v549_v45, %v551_v44  ;;  %p1058_p9 = pnand %p1057_p5, %p1273_p10  ;;  %s1062_s7 = scalar_lea.vmem %s1061_s27, 512 }
  0x82   : > { %809 = vmatprep.subr.bf16.mxu0 %v943_v2  ;;  %p1063_p2 = scmp.lt.s32.totalorder %s1411_s30, %s1061_s27  ;;  %p1064_p7 = scmp.lt.s32.totalorder %s1062_s7, %s1056_s23 }
  0x83   : > { %p1059_p1 = pneg %p1058_p9 }
  0x84   : > { %p1065_p4 = por %p1064_p7, %p1063_p2 }
  0x85   : > { %810 = vmatpush3.bf16.msra.mxu0 %v943_v2 }
  0x86   : > { %811 = vmatprep.subr.bf16.mxu0 %v944_v3  ;;  %p1066_p8 = pnand %p1065_p4, %p1059_p1 }
  0x89   : > { %812 = vmatpush3.bf16.msra.mxu0 %v944_v3 }
  0x8a   : > { %813 = vmatprep.subr.bf16.mxu0 %v945_v5 }
  0x8d   : > { %814 = vmatpush3.bf16.msra.mxu0 %v945_v5 }
  0x8e   : > { %815 = vmatprep.subr.bf16.mxu0 %v946_v6 }
  0x91   : > { %816 = vmatpush3.bf16.msra.mxu0 %v946_v6 }
  0x92   : > { %817 = vmatprep.subr.bf16.mxu0 %v947_v7 }
  0x95   : > { %818 = vmatpush3.bf16.msra.mxu0 %v947_v7 }
  0x96   : > { %819 = vmatprep.subr.bf16.mxu0 %v948_v8 }
  0x99   : > { %820 = vmatpush3.bf16.msra.mxu0 %v948_v8 }
  0x9c   : > { %822 = vmatmul.mubr.bf16.vlgmr.msra.gmra.mrb[0].mxu0 %v950_v9 }
  0x9d   : > { %825 = vmatprep.mubr.bf16.mxu0 %v951_v10 }
  0xa4   : > { %826 = vmatmul.mubr.bf16.gmra.mrb[4].mxu0 %v952_v11 }
  0xa5   : > { %829 = vmatprep.mubr.bf16.mxu0 %v953_v12 }
  0xac   : > { %830 = vmatmul.mubr.bf16.gmra.mrb[8].mxu0 %v954_v13 }
  0xad   : > { %833 = vmatprep.mubr.bf16.mxu0 %v955_v14 }
  0xb4   : > { %834 = vmatmul.mubr.bf16.gmra.mrb[12].mxu0 %v956_v15 }
 0x16f   : > { %v823_v17 = vpop.f32.mrb[0].mxu0 }
 0x170   : > { %v427_v18 = vpop.f32.mrb[1].mxu0 }
 0x171   : > { %v824_v19 = vpop.f32.mrb[2].mxu0 }
 0x172   : > { %v491_v20 = vpack.c.bf16 %v824_v19, %v823_v17  ;;  %v430_v21 = vpop.f32.mrb[3].mxu0 }
 0x173   : > { %v490_v22 = vpack.c.bf16 %v430_v21, %v427_v18 }
 0x175   : > { %838 = vmatpush3.bf16.msra.mxu1 %v490_v22 }
 0x176   : > { %839 = vmatprep.subr.bf16.mxu1 %v1153_v16 }
 0x177   : > { %v827_v23 = vpop.f32.mrb[4].mxu0 }
 0x178   : > { %v443_v24 = vpop.f32.mrb[5].mxu0 }
 0x179   : > { %v828_v25 = vpop.f32.mrb[6].mxu0  ;;  %840 = vmatpush3.bf16.msra.mxu1 %v491_v20 }
 0x17a   : > { %v493_v26 = vpack.c.bf16 %v828_v25, %v827_v23  ;;  %v446_v27 = vpop.f32.mrb[7].mxu0  ;;  %841 = vmatprep.subr.bf16.mxu1 %v1153_v16 }
 0x17b   : > { %v492_v28 = vpack.c.bf16 %v446_v27, %v443_v24 }
 0x17d   : > { %842 = vmatpush3.bf16.msra.mxu1 %v492_v28 }
 0x17e   : > { %843 = vmatprep.subr.bf16.mxu1 %v1153_v16 }
 0x17f   : > { %v831_v29 = vpop.f32.mrb[8].mxu0 }
 0x180   : > { %v459_v30 = vpop.f32.mrb[9].mxu0 }
 0x181   : > { %v832_v31 = vpop.f32.mrb[10].mxu0  ;;  %844 = vmatpush3.bf16.msra.mxu1 %v493_v26 }
 0x182   : > { %v495_v32 = vpack.c.bf16 %v832_v31, %v831_v29  ;;  %v462_v33 = vpop.f32.mrb[11].mxu0  ;;  %845 = vmatprep.subr.bf16.mxu1 %v1153_v16 }
 0x183   : > { %v494_v34 = vpack.c.bf16 %v462_v33, %v459_v30 }
 0x185   : > { %846 = vmatpush3.bf16.msra.mxu1 %v494_v34 }
 0x186   : > { %847 = vmatprep.subr.bf16.mxu1 %v1153_v16 }
 0x187   : > { %v835_v35 = vpop.f32.mrb[12].mxu0 }
 0x188   : > { %v475_v36 = vpop.f32.mrb[13].mxu0 }
 0x189   : > { %v836_v37 = vpop.f32.mrb[14].mxu0  ;;  %848 = vmatpush3.bf16.msra.mxu1 %v495_v32 }
 0x18a   : > { %v497_v38 = vpack.c.bf16 %v836_v37, %v835_v35  ;;  %v478_v39 = vpop.f32.mrb[15].mxu0  ;;  %849 = vmatprep.subr.bf16.mxu1 %v1153_v16 }
 0x18b   : > { %v496_v40 = vpack.c.bf16 %v478_v39, %v475_v36 }
 0x18d   : > { %850 = vmatpush3.bf16.msra.mxu1 %v496_v40 }
 0x18e   : > { %851 = vmatprep.subr.bf16.mxu1 %v1153_v16 }
 0x191   : > { %852 = vmatpush3.bf16.msra.mxu1 %v497_v38 }
 0x194   : > { %854 = vmatmul.mubr.bf16.vlgmr.msra.gmra.mrb[0].mxu1 %v957_v41 }
 0x267   : > { %v540_v46 = vpop.f32.mrb[0].mxu1 }
 0x268   : > { %v561_v47 = vadd.f32 1.0, %v540_v46  ;;  %v855_v48 = vpop.f32.mrb[1].mxu1 }
 0x269   : > { %v543_v49 = vpop.f32.mrb[2].mxu1 }
 0x26a   : > { %v563_v50 = vsel %vm555_vm1, %v561_v47, %v540_v46  ;;  %v562_v51 = vadd.f32 1.0, %v543_v49  ;;  %v856_v52 = vpop.f32.mrb[3].mxu1 }
 0x26b   : > { %v565_v54 = vmax.f32 %v563_v50, 0.0 }
 0x26c   : > { %v564_v53 = vsel %vm556_vm2, %v562_v51, %v543_v49 }
 0x26d   : > { %v566_v55 = vmax.f32 %v564_v53, 0.0 }
 0x26f   : > { %v567_v56 = vadd.f32 %v566_v55, %v565_v54 }
 0x271   : > { %v568_v57 = vrot.slane %v567_v56, 4 }
 0x273   : > { %v569_v58 = vadd.f32 %v568_v57, %v567_v56 }
 0x275   : > { %v570_v59 = vrot.slane %v569_v58, 2 }
 0x277   : > { %v571_v60 = vadd.f32 %v570_v59, %v569_v58 }
 0x279   : > { %v572_v61 = vrot.slane %v571_v60, 1 }
 0x27b   : > { %v573_v62 = vadd.f32 %v572_v61, %v571_v60 }
 0x27d   : > { %v574_v63 = vmul.f32 0.0625, %v573_v62 }
 0x27f   : > { %v575_v0 = vadd.f32 1e-06, %v574_v63 }
 0x281   : > { %958 = vrcp.f32 %v575_v0 }
 0x28b   : > { %v959_v1 = vpop.eup %958 }
 0x28c   : > { %v577_v2 = vmul.f32 %v959_v1, %v565_v54  ;;  %v578_v3 = vmul.f32 %v959_v1, %v566_v55 }
 0x28e   : > { %v579_v4 = vsub.f32 0.0, %v577_v2  ;;  %v580_v5 = vsub.f32 0.0, %v578_v3 }
 0x290   : > { %v581_v6 = vmul.f32 1.442695, %v579_v4  ;;  %v583_v7 = vmul.f32 1.442695, %v580_v5 }
 0x292   : > { %960 = vpow2.f32 %v581_v6 }
 0x293   : > { %962 = vpow2.f32 %v583_v7 }
 0x29c   : > { %v961_v8 = vpop.eup %960 }
 0x29d   : > { %v963_v9 = vpop.eup %962  ;;  %v585_v10 = vadd.f32 1.0, %v961_v8  ;;  %v588_v12 = vmul.f32 -0.5, %v961_v8  ;;  %v591_v15 = vand.u32 2147483647, %v961_v8 }
 0x29e   : > { %v594_v11 = vadd.f32 1.0, %v963_v9  ;;  %v597_v13 = vmul.f32 -0.5, %v963_v9  ;;  %v600_v17 = vand.u32 2147483647, %v963_v9 }
 0x29f   : > { %964 = vlog2.f32 %v585_v10  ;;  %v589_v14 = vadd.f32 1.0, %v588_v12  ;;  %vm592_vm3 = vcmp.lt.f32.partialorder %v591_v15, 0.0004427343 }
 0x2a0   : > { %966 = vlog2.f32 %v594_v11  ;;  %v598_v16 = vadd.f32 1.0, %v597_v13  ;;  %vm601_vm4 = vcmp.lt.f32.partialorder %v600_v17, 0.0004427343 }
 0x2a1   : > { %v590_v21 = vmul.f32 %v961_v8, %v589_v14 }
 0x2a2   : > { %v599_v23 = vmul.f32 %v963_v9, %v598_v16 }
 0x2a9   : > { %v965_v18 = vpop.eup %964 }
 0x2aa   : > { %v967_v19 = vpop.eup %966  ;;  %v587_v20 = vmul.f32 0.6931472, %v965_v18 }
 0x2ab   : > { %v596_v22 = vmul.f32 0.6931472, %v967_v19 }
 0x2ac   : > { %v593_v24 = vsel %vm592_vm3, %v590_v21, %v587_v20 }
 0x2ad   : > { %v602_v25 = vsel %vm601_vm4, %v599_v23, %v596_v22  ;;  %v603_v26 = vadd.f32 %v593_v24, %v577_v2 }
 0x2ae   : > { %v604_v27 = vadd.f32 %v602_v25, %v578_v3 }
 0x2af   : > { %605 = vst [vmem:[%s263_s20] sm:$0xff] %v603_v26 }
 0x2b0   : > { %606 = vst [vmem:[%s263_s20 + $0x8] sm:$0xff] %v604_v27 }
 0x2b1   : > { %1069 = shalt.err (!%p1066_p8)
}
 0x2b2   : > { %s1070_s19 = scalar_lea.hbm %s1416_s4, 256  ;;  %s1074_s10 = scalar_lea.hbm %s1468_s3, 512 }
 0x2b3   : > { %p1071_p11 = scmp.ne.s32.totalorder %s1416_s4, %s1070_s19  ;;  %p1075_p6 = scmp.lt.u32.totalorder %s1416_s4, %s1468_s3 }
 0x2b4   : > { %p1076_p13 = scmp.lt.u32.totalorder %s1074_s10, %s1070_s19  ;;  %p1078_p5 = scmp.lt.u32.totalorder %s1070_s19, %s1416_s4 }
 0x2b5   : > { %p1072_p12 = pnand %p1071_p11, %p1273_p10 }
 0x2b6   : > { %p1077_p0 = por %p1076_p13, %p1075_p6 }
 0x2b7   : > { %p1073_p3 = pneg %p1072_p12 }
 0x2b8   : > { %p1079_p9 = por %p1078_p5, %p1077_p0 }
 0x2ba   : > { %p1080_p1 = pnand %p1079_p9, %p1073_p3 }
 0x2bc   : > { %1083 = shalt.err (!%p1080_p1)
}
 0x2bd   : > { %s1156_s9 = smov 128   ;;  %s1157_s11 = smov 8  }
 0x2be   : > { %865 = dma.vmem_to_hbm [thread:$0]  (%p1273_p10), %s1411_s30, 256, %s1416_s4, %s608_s15, %s1156_s9, %s1156_s9, %s1157_s11  }
 0x2bf PF: > { %s637_s18 = sand.u32 1, %s1126_s12   ;;  %p1494_p2 = scmp.ne.s32.totalorder %s1478_s21, 0 }
 0x2c0   : > { %p1495_p7 = scmp.ge.s32.totalorder %s1146_s17, 2  ;;  %s638_s20 = scalar_lea.sflag [#allocation4], %s637_s18 }
 0x2c2   : > { %p879_p4 = pnand %p1495_p7, %p1494_p2 }
 0x2c4   : > { %1121 = dma.done.wait (!%p879_p4), %s638_s20, 256  }
 0x2c5   : > { %1123 = vsyncadd (!%p879_p4), %s638_s20, 4294967040  ;;  %s22_s17 = sadd.s32 1, %s1146_s17   ;;  %s1496_s25 = sld [smem:[#allocation13_spill]] }
 0x2c6   : > { %p19_p8 = scmp.ge.s32.totalorder %s22_s17, 4   ;;  %s1497_s12 = smov %s1130_s13 }
 0x2c7   : > { %s1498_s13 = smov %s1134_s14  ;;  %s1499_s14 = smov %s1285_s29 }
 0x2c8   : > { %s1500_s15 = smov %s1142_s16  ;;  %21 = sbr.rel (!%p19_p8) target bundleno = 11 (0xb), region = 95 }
 0x2cb   : > { %s1501_s16 = smov %s1496_s25 }
 0x2cf   :  { %643 = vsyncpa [#allocation3], 1 }
 0x2d0   :  { %645 = vsyncpa [#allocation3 + $0x1], 1 }
 0x2d1   :  { %646 = vsyncpa [#allocation6], 1 }
 0x2d2   :  { %648 = vsyncpa [#allocation6 + $0x1], 1 }
 0x2d3   :  { %649 = vsyncpa [#allocation4], 1 }
 0x2d4   :  { %651 = vsyncpa [#allocation4 + $0x1], 1 }

</bundles_post_ra>
